<compile_context>
chip_gen: v5e
topology: v5e:2x2
jax: 0.10.0
libtpu: 0.0.40
codegen_flags: <defaults>
</compile_context>

<pallas_src>
import functools

import jax
import jax.numpy as jnp
from jax.experimental import pallas as pl
from jax.experimental.pallas import tpu as pltpu

HIDDEN = 64            # logical hidden size (matches nn.Linear(obs, 64))
HIDDEN_PAD = 128       # lane-dense padded hidden size
ACTION_PAD = 128       # lane-dense padded w3 output size (MXU tile); store is narrow
DEFAULT_TILE_B = 1024  # batch tile (rows per grid step)


def _round_up(x, m):
    return ((x + m - 1) // m) * m


def qnetwork_kernel(x_ref, w1_ref, b1_ref, w2_ref, b2_ref, w3_ref, b3_ref, o_ref,
                    *, tanh_dtype):
    """One batch tile of the fused 3-layer MLP.

    x_ref : (TB, OBS)      f32  (cast to bf16 in-kernel)
    w1    : (OBS, 128)     bf16   b1: (1, 128) f32
    w2    : (128, 128)     bf16   b2: (1, 128) f32
    w3    : (128, 128)     bf16   b3: (1, 128) f32
    o_ref : (TB, num_action) f32  (narrow store; only real Q-values reach HBM)
    """
    x = x_ref[...].astype(jnp.bfloat16)
    # Layer 1: bf16 matmul on the MXU, f32 accumulate; tanh in bf16 (v6e/v7x) or f32 (v5e).
    z1 = jnp.dot(x, w1_ref[...], preferred_element_type=jnp.float32) + b1_ref[...]
    h1 = jnp.tanh(z1.astype(tanh_dtype)).astype(jnp.bfloat16)
    # Layer 2.
    z2 = jnp.dot(h1, w2_ref[...], preferred_element_type=jnp.float32) + b2_ref[...]
    h2 = jnp.tanh(z2.astype(tanh_dtype)).astype(jnp.bfloat16)
    # Layer 3 (no activation); keep only the real action columns for the HBM writeback.
    logits = jnp.dot(h2, w3_ref[...], preferred_element_type=jnp.float32) + b3_ref[...]
    o_ref[...] = logits[:, : o_ref.shape[1]].astype(o_ref.dtype)


def prepare_padded_params(params):
    """Pad to lane-dense shapes and cast weights to bf16. Call once, reuse per step.

    Zero padding keeps semantics exact: padded bias entries are 0 so tanh(0)=0 in the
    padded hidden columns, padded weight rows/cols are 0 so nothing leaks into the
    real output columns (which are the only ones stored anyway).
    """
    obs = params["w1"].shape[0]

    def pad2(a, rows, cols):
        return jnp.pad(a, ((0, rows - a.shape[0]), (0, cols - a.shape[1])))

    return {
        "w1": pad2(params["w1"], obs, HIDDEN_PAD).astype(jnp.bfloat16),
        "b1": pad2(params["b1"], 1, HIDDEN_PAD).astype(jnp.float32),
        "w2": pad2(params["w2"], HIDDEN_PAD, HIDDEN_PAD).astype(jnp.bfloat16),
        "b2": pad2(params["b2"], 1, HIDDEN_PAD).astype(jnp.float32),
        "w3": pad2(params["w3"], HIDDEN_PAD, ACTION_PAD).astype(jnp.bfloat16),
        "b3": pad2(params["b3"], 1, ACTION_PAD).astype(jnp.float32),
    }


@functools.partial(jax.jit, static_argnames=("num_action", "tile_b", "tanh_dtype"))
def _qnetwork_forward_impl(x, p, *, num_action, tile_b, tanh_dtype):
    B, obs = x.shape

    # Tile selection:
    #  * at least 2 tiles so the "parallel" batch axis can split across both v7x TCs,
    #  * tile sized near B / n_tiles so batch padding stays below one tile,
    #  * multiple of 16 for sublane/packing friendliness.
    n_tiles = max(2, pl.cdiv(B, tile_b))
    tb = _round_up(pl.cdiv(B, n_tiles), 16)
    b_pad = _round_up(B, tb)
    if b_pad != B:
        x = jnp.pad(x, ((0, b_pad - B), (0, 0)))
    grid = (b_pad // tb,)

    kernel = functools.partial(qnetwork_kernel, tanh_dtype=tanh_dtype)

    out = pl.pallas_call(
        kernel,
        out_shape=jax.ShapeDtypeStruct((b_pad, num_action), jnp.float32),
        grid=grid,
        in_specs=[
            # x: tiled over the batch (f32; cast inside the kernel).
            pl.BlockSpec((tb, obs), lambda i: (i, 0)),
            # weights / biases: constant index_map -> stay VMEM-resident across tiles.
            pl.BlockSpec((obs, HIDDEN_PAD), lambda i: (0, 0)),          # w1
            pl.BlockSpec((1, HIDDEN_PAD), lambda i: (0, 0)),            # b1
            pl.BlockSpec((HIDDEN_PAD, HIDDEN_PAD), lambda i: (0, 0)),   # w2
            pl.BlockSpec((1, HIDDEN_PAD), lambda i: (0, 0)),            # b2
            pl.BlockSpec((HIDDEN_PAD, ACTION_PAD), lambda i: (0, 0)),   # w3
            pl.BlockSpec((1, ACTION_PAD), lambda i: (0, 0)),            # b3
        ],
        # Narrow, full-array-width last dim (== num_action): no padded f32 slab in HBM.
        out_specs=pl.BlockSpec((tb, num_action), lambda i: (i, 0)),
        compiler_params=pltpu.CompilerParams(
            dimension_semantics=("parallel",),          # shard tiles across TCs on v7x
            vmem_limit_bytes=32 * 1024 * 1024,
        ),
    )(x, p["w1"], p["b1"], p["w2"], p["b2"], p["w3"], p["b3"])

    return out[:B] if b_pad != B else out


def qnetwork_forward(x, padded_params, *, num_action, tile_b=DEFAULT_TILE_B,
                     tanh_dtype=None):
    """x: [B, num_observe] float32. padded_params: output of prepare_padded_params."""
    if tanh_dtype is None:
        try:
            kind = jax.devices()[0].device_kind.lower()
        except Exception:
            kind = ""
        # bf16 EUP only on v6e / v7x; keep f32 tanh on v5e and older.
        tanh_dtype = jnp.bfloat16 if ("v6" in kind or "v7" in kind) else jnp.float32
    return _qnetwork_forward_impl(x, padded_params, num_action=num_action,
                                  tile_b=tile_b, tanh_dtype=tanh_dtype)


def init_params(key, num_observe, num_action, hidden=HIDDEN):
    """PyTorch-style init: U(-1/sqrt(fan_in), 1/sqrt(fan_in)).
    Weights stored (in_features, out_features) (transposed vs torch), f32."""
    ks = jax.random.split(key, 6)

    def linear(kw, kb, fan_in, fan_out):
        bound = 1.0 / jnp.sqrt(jnp.float32(fan_in))
        w = jax.random.uniform(kw, (fan_in, fan_out), jnp.float32, -bound, bound)
        b = jax.random.uniform(kb, (1, fan_out), jnp.float32, -bound, bound)
        return w, b

    w1, b1 = linear(ks[0], ks[1], num_observe, hidden)
    w2, b2 = linear(ks[2], ks[3], hidden, hidden)
    w3, b3 = linear(ks[4], ks[5], hidden, num_action)
    return {"w1": w1, "b1": b1, "w2": w2, "b2": b2, "w3": w3, "b3": b3}


def reference_forward(x, p):
    h1 = jnp.tanh(x @ p["w1"] + p["b1"])
    h2 = jnp.tanh(h1 @ p["w2"] + p["b2"])
    return h2 @ p["w3"] + p["b3"]


if __name__ == "__main__":
    # CartPole-like environment: observation dim 4, action dim 2.
    NUM_OBSERVE = 4
    NUM_ACTION = 2
    BATCH = 8  # small demo batch; batch env/replay steps for real throughput.

    key = jax.random.PRNGKey(0)
    k_params, k_x = jax.random.split(key)
    params = init_params(k_params, NUM_OBSERVE, NUM_ACTION)
    padded_params = prepare_padded_params(params)  # pad + bf16 cast once, reuse per call
    x = jax.random.normal(k_x, (BATCH, NUM_OBSERVE), jnp.float32)

    out = qnetwork_forward(x, padded_params, num_action=NUM_ACTION)
    out = jax.block_until_ready(out)

    ref = reference_forward(x, params)
    assert out.shape == (BATCH, NUM_ACTION), out.shape
    # bf16 operands (f32 accumulation) -> looser tolerance vs the f32 reference.
    assert jnp.allclose(out, ref, atol=5e-2, rtol=5e-2), jnp.max(jnp.abs(out - ref))

    print("KERNEL_OK")
</pallas_src>

<mosaic_0001>
module attributes {stable_mosaic.version = 11 : i64} {
  func.func @qnetwork_kernel(%arg0: i32, %arg1: memref<16x4xf32, #tpu.memory_space<vmem>>, %arg2: memref<4x128xbf16, #tpu.memory_space<vmem>>, %arg3: memref<1x128xf32, #tpu.memory_space<vmem>>, %arg4: memref<128x128xbf16, #tpu.memory_space<vmem>>, %arg5: memref<1x128xf32, #tpu.memory_space<vmem>>, %arg6: memref<128x128xbf16, #tpu.memory_space<vmem>>, %arg7: memref<1x128xf32, #tpu.memory_space<vmem>>, %arg8: memref<16x2xf32, #tpu.memory_space<vmem>>) attributes {dimension_semantics = [#tpu.dimension_semantics<parallel>], iteration_bounds = array<i64: 1>, scalar_prefetch = 0 : i64, scratch_operands = 0 : i64, tpu.core_type = #tpu.core_type<tc>, window_params = [{transform_indices = @transform_0, window_bounds = array<i64: 16, 4>}, {pipeline_mode = #tpu.pipeline_mode<synchronous>, transform_indices = @transform_1, window_bounds = array<i64: 4, 128>}, {pipeline_mode = #tpu.pipeline_mode<synchronous>, transform_indices = @transform_2, window_bounds = array<i64: 1, 128>}, {pipeline_mode = #tpu.pipeline_mode<synchronous>, transform_indices = @transform_3, window_bounds = array<i64: 128, 128>}, {pipeline_mode = #tpu.pipeline_mode<synchronous>, transform_indices = @transform_4, window_bounds = array<i64: 1, 128>}, {pipeline_mode = #tpu.pipeline_mode<synchronous>, transform_indices = @transform_5, window_bounds = array<i64: 128, 128>}, {pipeline_mode = #tpu.pipeline_mode<synchronous>, transform_indices = @transform_6, window_bounds = array<i64: 1, 128>}, {transform_indices = @transform_7, window_bounds = array<i64: 16, 2>}]} {
    %c0 = arith.constant 0 : index
    %c0_0 = arith.constant 0 : index
    %0 = vector.load %arg1[%c0, %c0_0] : memref<16x4xf32, #tpu.memory_space<vmem>>, vector<16x4xf32>
    %1 = arith.truncf %0 : vector<16x4xf32> to vector<16x4xbf16>
    %c0_1 = arith.constant 0 : index
    %c0_2 = arith.constant 0 : index
    %2 = vector.load %arg2[%c0_1, %c0_2] : memref<4x128xbf16, #tpu.memory_space<vmem>>, vector<4x128xbf16>
    %cst = arith.constant dense<0.000000e+00> : vector<16x128xf32>
    %3 = tpu.matmul %1, %2, %cst {dimension_numbers = #tpu.dot_dimension_numbers<[1], [0], [0], [1], [0, 0, 1, 1], [], []>} : vector<16x4xbf16>, vector<4x128xbf16>, vector<16x128xf32> -> vector<16x128xf32>
    %c0_3 = arith.constant 0 : index
    %c0_4 = arith.constant 0 : index
    %4 = vector.load %arg3[%c0_3, %c0_4] : memref<1x128xf32, #tpu.memory_space<vmem>>, vector<1x128xf32>
    %5 = vector.broadcast %4 : vector<1x128xf32> to vector<16x128xf32>
    %6 = arith.addf %3, %5 : vector<16x128xf32>
    %7 = math.tanh %6 : vector<16x128xf32>
    %8 = arith.truncf %7 : vector<16x128xf32> to vector<16x128xbf16>
    %c0_5 = arith.constant 0 : index
    %c0_6 = arith.constant 0 : index
    %9 = vector.load %arg4[%c0_5, %c0_6] : memref<128x128xbf16, #tpu.memory_space<vmem>>, vector<128x128xbf16>
    %cst_7 = arith.constant dense<0.000000e+00> : vector<16x128xf32>
    %10 = tpu.matmul %8, %9, %cst_7 {dimension_numbers = #tpu.dot_dimension_numbers<[1], [0], [0], [1], [0, 0, 1, 1], [], []>} : vector<16x128xbf16>, vector<128x128xbf16>, vector<16x128xf32> -> vector<16x128xf32>
    %c0_8 = arith.constant 0 : index
    %c0_9 = arith.constant 0 : index
    %11 = vector.load %arg5[%c0_8, %c0_9] : memref<1x128xf32, #tpu.memory_space<vmem>>, vector<1x128xf32>
    %12 = vector.broadcast %11 : vector<1x128xf32> to vector<16x128xf32>
    %13 = arith.addf %10, %12 : vector<16x128xf32>
    %14 = math.tanh %13 : vector<16x128xf32>
    %15 = arith.truncf %14 : vector<16x128xf32> to vector<16x128xbf16>
    %c0_10 = arith.constant 0 : index
    %c0_11 = arith.constant 0 : index
    %16 = vector.load %arg6[%c0_10, %c0_11] : memref<128x128xbf16, #tpu.memory_space<vmem>>, vector<128x128xbf16>
    %cst_12 = arith.constant dense<0.000000e+00> : vector<16x128xf32>
    %17 = tpu.matmul %15, %16, %cst_12 {dimension_numbers = #tpu.dot_dimension_numbers<[1], [0], [0], [1], [0, 0, 1, 1], [], []>} : vector<16x128xbf16>, vector<128x128xbf16>, vector<16x128xf32> -> vector<16x128xf32>
    %c0_13 = arith.constant 0 : index
    %c0_14 = arith.constant 0 : index
    %18 = vector.load %arg7[%c0_13, %c0_14] : memref<1x128xf32, #tpu.memory_space<vmem>>, vector<1x128xf32>
    %19 = vector.broadcast %18 : vector<1x128xf32> to vector<16x128xf32>
    %20 = arith.addf %17, %19 : vector<16x128xf32>
    %21 = vector.extract_strided_slice %20 {offsets = [0, 0], sizes = [16, 2], strides = [1, 1]} : vector<16x128xf32> to vector<16x2xf32>
    %c0_15 = arith.constant 0 : index
    %c0_16 = arith.constant 0 : index
    %22 = vector.load %arg8[%c0_15, %c0_16] : memref<16x2xf32, #tpu.memory_space<vmem>>, vector<16x2xf32>
    tpu.vector_store %arg8[%c0_15, %c0_16], %21 {strides = array<i32>} : memref<16x2xf32, #tpu.memory_space<vmem>>, vector<16x2xf32>,
    return
  }
  func.func @transform_0(%arg0: i32) -> (i32, i32) {
    %c0_i32 = arith.constant 0 : i32
    %c0_i32_0 = arith.constant 0 : i32
    return %arg0, %c0_i32 : i32, i32
  }
  func.func @transform_1(%arg0: i32) -> (i32, i32) {
    %c0_i32 = arith.constant 0 : i32
    %c0_i32_0 = arith.constant 0 : i32
    %c0_i32_1 = arith.constant 0 : i32
    return %c0_i32, %c0_i32_0 : i32, i32
  }
  func.func @transform_2(%arg0: i32) -> (i32, i32) {
    %c0_i32 = arith.constant 0 : i32
    %c0_i32_0 = arith.constant 0 : i32
    %c0_i32_1 = arith.constant 0 : i32
    return %c0_i32, %c0_i32_0 : i32, i32
  }
  func.func @transform_3(%arg0: i32) -> (i32, i32) {
    %c0_i32 = arith.constant 0 : i32
    %c0_i32_0 = arith.constant 0 : i32
    %c0_i32_1 = arith.constant 0 : i32
    return %c0_i32, %c0_i32_0 : i32, i32
  }
  func.func @transform_4(%arg0: i32) -> (i32, i32) {
    %c0_i32 = arith.constant 0 : i32
    %c0_i32_0 = arith.constant 0 : i32
    %c0_i32_1 = arith.constant 0 : i32
    return %c0_i32, %c0_i32_0 : i32, i32
  }
  func.func @transform_5(%arg0: i32) -> (i32, i32) {
    %c0_i32 = arith.constant 0 : i32
    %c0_i32_0 = arith.constant 0 : i32
    %c0_i32_1 = arith.constant 0 : i32
    return %c0_i32, %c0_i32_0 : i32, i32
  }
  func.func @transform_6(%arg0: i32) -> (i32, i32) {
    %c0_i32 = arith.constant 0 : i32
    %c0_i32_0 = arith.constant 0 : i32
    %c0_i32_1 = arith.constant 0 : i32
    return %c0_i32, %c0_i32_0 : i32, i32
  }
  func.func @transform_7(%arg0: i32) -> (i32, i32) {
    %c0_i32 = arith.constant 0 : i32
    %c0_i32_0 = arith.constant 0 : i32
    return %arg0, %c0_i32 : i32, i32
  }
}

</mosaic_0001>

<bundles_post_ra>
// kernel: _qnetwork_forward_impl.1
= control target key start
LH: loop header
LB: loop body
LE: loop exit
PB: predicated region body
PF: predicated region fallthrough
CT: control target
= control target key end

     0   :  { %12 = vsyncpa [#allocation3], 0  ;;  %s490_s0 = inlined_call_operand.vmem [shape: f32[16,4], index: 0, kind: input, shape index: {}]   ;;  %s491_s1 = inlined_call_operand.vmem [shape: bf16[4,128], index: 1, kind: input, shape index: {}]   ;;  %s492_s2 = inlined_call_operand.vmem [shape: f32[1,128], index: 2, kind: input, shape index: {}]   ;;  %s493_s3 = inlined_call_operand.hbm [shape: bf16[128,128], index: 3, kind: input, shape index: {}]   ;;  %s494_s4 = inlined_call_operand.vmem [shape: f32[1,128], index: 4, kind: input, shape index: {}]   ;;  %s495_s5 = inlined_call_operand.hbm [shape: bf16[128,128], index: 5, kind: input, shape index: {}]   ;;  %s496_s6 = inlined_call_operand.vmem [shape: f32[1,128], index: 6, kind: input, shape index: {}]   ;;  %s497_s7 = inlined_call_operand.vmem [shape: f32[16,2], index: 7, kind: output, shape index: {}]  }
   0x1   :  { %s24_s26 = sshll.u32 %s493_s3, 4  ;;  %s25_s26 = int_to_ptr.hbm [resolvable:$true] %s24_s26 }
   0x2   :  { %13 = vsyncpa [#allocation5], 0  ;;  %s416_s27 = smov [#allocation2]   ;;  %s39_s8 = sshll.u32 %s495_s5, 4  ;;  %s40_s8 = int_to_ptr.hbm [resolvable:$true] %s39_s8 }
   0x3   :  { %s26_s28 = sshll.u32 %s416_s27, 4  ;;  %s417_s9 = smov 64   ;;  %s27_s28 = int_to_ptr.vmem [resolvable:$true] %s26_s28 }
   0x4   :  { %s418_s10 = smov 4   ;;  %s419_s11 = smov [#allocation4]  }
   0x5   :  { %32 = dma.hbm_to_vmem [thread:$0]  %s25_s26, 1024, %s27_s28, [#allocation3], %s417_s9, %s417_s9, %s418_s10  }
   0x6   :  { %s41_s12 = sshll.u32 %s419_s11, 4  ;;  %s42_s12 = int_to_ptr.vmem [resolvable:$true] %s41_s12 }
   0x7   :  { %47 = dma.hbm_to_vmem [thread:$0]  %s40_s8, 1024, %s42_s12, [#allocation5], %s417_s9, %s417_s9, %s418_s10  }
   0x8   :  { %412 = dma.done.wait [#allocation3], 1024  }
   0x9   :  { %413 = vsyncadd [#allocation3], 4294966272 }
   0xa   :  { %414 = dma.done.wait [#allocation5], 1024  }
   0xb   :  { %415 = vsyncadd [#allocation5], 4294966272  ;;  %vm71_vm0 = vcmask 1041408   ;;  %v62_v0 = vld [vmem:[%s491_s1] sm:$0x3]  ;;  %v60_v2 = vld [vmem:[%s490_s0 + $0x8] sm:$0xff] }
   0xc   :  { %v59_v1 = vld [vmem:[%s490_s0] sm:$0xff]  ;;  %v73_v3 = vsel %vm71_vm0, %v62_v0, 0  ;;  %v340_v5 = vld [vmem:[#allocation2 + $0x38] sm:$0xff]  ;;  %vm67_vm1 = vcmask 31744   ;;  %v339_v6 = vld [vmem:[#allocation2 + $0x30] sm:$0xff]  ;;  %vm259_vm2 = vcmask 15360  }
   0xd   :  { %v61_v4 = vpack.c.bf16 %v60_v2, %v59_v1  ;;  %82 = vmatpush.bf16.msra.mxu0 %v73_v3  ;;  %160 = vmatpush.bf16.msra.mxu1 %v340_v5  ;;  %v338_v7 = vld [vmem:[#allocation2 + $0x28] sm:$0xff]  ;;  %v337_v8 = vld [vmem:[#allocation2 + $0x20] sm:$0xff]  ;;  %v336_v9 = vld [vmem:[#allocation2 + $0x18] sm:$0xff] }
   0xe   :  { %v335_v10 = vld [vmem:[#allocation2 + $0x10] sm:$0xff]  ;;  %v334_v11 = vld [vmem:[#allocation2 + $0x8] sm:$0xff]  ;;  %v333_v12 = vld [vmem:[#allocation2] sm:$0xff] }
   0xf   :  { %v348_v13 = vld [vmem:[#allocation4 + $0x38] sm:$0xff]  ;;  %v347_v14 = vld [vmem:[#allocation4 + $0x30] sm:$0xff]  ;;  %v346_v15 = vld [vmem:[#allocation4 + $0x28] sm:$0xff] }
  0x10   :  { %268 = vmatmul.msk.bf16.vlgmr.msra.gmra.mxu0 %vm67_vm1, %v61_v4  ;;  %245 = vmatpush.bf16.msra.mxu2 %v348_v13  ;;  %v353_v17 = vld [vmem:[%s492_s2] ss:$0 sm:$0xff]  ;;  %v344_v25 = vld [vmem:[#allocation4 + $0x18] sm:$0xff]  ;;  %v343_v26 = vld [vmem:[#allocation4 + $0x10] sm:$0xff] }
  0x11   :  { %161 = vmatpush.bf16.msra.mxu1 %v339_v6  ;;  %v345_v24 = vld [vmem:[#allocation4 + $0x20] sm:$0xff]  ;;  %v342_v27 = vld [vmem:[#allocation4 + $0x8] sm:$0xff] }
  0x12   :  { %v341_v28 = vld [vmem:[#allocation4] sm:$0xff] }
  0x13   :  { %v354_v30 = vld [vmem:[%s494_s4] ss:$0 sm:$0xff] }
  0x14   :  { %246 = vmatpush.bf16.msra.mxu2 %v347_v14  ;;  %v355_v37 = vld [vmem:[%s496_s6] ss:$0 sm:$0xff] }
  0x15   :  { %162 = vmatpush.bf16.msra.mxu1 %v338_v7 }
  0x18   :  { %247 = vmatpush.bf16.msra.mxu2 %v346_v15 }
  0x19   :  { %163 = vmatpush.bf16.msra.mxu1 %v337_v8 }
  0x1c   :  { %248 = vmatpush.bf16.msra.mxu2 %v345_v24 }
  0x1d   :  { %164 = vmatpush.bf16.msra.mxu1 %v336_v9 }
  0x20   :  { %249 = vmatpush.bf16.msra.mxu2 %v344_v25 }
  0x21   :  { %165 = vmatpush.bf16.msra.mxu1 %v335_v10 }
  0x24   :  { %250 = vmatpush.bf16.msra.mxu2 %v343_v26 }
  0x25   :  { %166 = vmatpush.bf16.msra.mxu1 %v334_v11 }
  0x28   :  { %251 = vmatpush.bf16.msra.mxu2 %v342_v27 }
  0x29   :  { %167 = vmatpush.bf16.msra.mxu1 %v333_v12 }
  0x2c   :  { %252 = vmatpush.bf16.msra.mxu2 %v341_v28 }
  0x8d   :  { %v84_v16 = vpop.f32.mrf.mxu0 }
  0x8e   :  { %v85_v18 = vadd.f32 %v353_v17, %v84_v16 }
  0x90   :  { %356 = vtanh.f32 %v85_v18 }
  0x95   :  { %v86_v19 = vpop.f32.mrf.mxu0 }
  0x96   :  { %v87_v20 = vadd.f32 %v353_v17, %v86_v19  ;;  %v357_v21 = vpop.eup %356 }
  0x98   :  { %358 = vtanh.f32 %v87_v20 }
  0x9e   :  { %v359_v22 = vpop.eup %358 }
  0x9f   :  { %v91_v23 = vpack.c.bf16 %v359_v22, %v357_v21 }
  0xa1   :  { %168 = vmatmul.bf16.vlgmr.msra.gmra.mxu1 %v91_v23 }
 0x11e   :  { %v169_v29 = vpop.f32.mrf.mxu1 }
 0x11f   :  { %v170_v31 = vadd.f32 %v354_v30, %v169_v29 }
 0x121   :  { %360 = vtanh.f32 %v170_v31 }
 0x126   :  { %v171_v32 = vpop.f32.mrf.mxu1 }
 0x127   :  { %v172_v33 = vadd.f32 %v354_v30, %v171_v32  ;;  %v361_v34 = vpop.eup %360 }
 0x129   :  { %362 = vtanh.f32 %v172_v33 }
 0x12f   :  { %v363_v35 = vpop.eup %362 }
 0x130   :  { %v176_v36 = vpack.c.bf16 %v363_v35, %v361_v34 }
 0x132   :  { %253 = vmatmul.bf16.vlgmr.msra.gmra.mxu2 %v176_v36 }
 0x1b5   :  { %v254_v38 = vpop.f32.mrf.mxu2 }
 0x1b6   :  { %v255_v39 = vadd.f32 %v355_v37, %v254_v38 }
 0x1b8   :  { %260 = vst.msk [vmem:[%s497_s7] sm:$0xff] %vm259_vm2, %v255_v39 }
 0x1bd   :  { %v256_v40 = vpop.f32.mrf.mxu2 }
 0x1be   :  { %v257_v41 = vadd.f32 %v355_v37, %v256_v40 }
 0x1c0   :  { %261 = vst.msk [vmem:[%s497_s7 + $0x8] sm:$0xff] %vm259_vm2, %v257_v41 }
 0x1c1   :  { %266 = vsyncpa [#allocation3], 1 }
 0x1c2   :  { %267 = vsyncpa [#allocation5], 1 }

</bundles_post_ra>
